<compile_context>
chip_gen: v7x
topology: tpu7x:2x2x1
jax: 0.10.0
libtpu: 0.0.40
codegen_flags: <defaults>
</compile_context>

<pallas_src>
import jax
import jax.numpy as jnp
from jax import lax
from jax.experimental import pallas as pl
from jax.experimental.pallas import tpu as pltpu


def _round_up(a: int, b: int) -> int:
    return ((a + b - 1) // b) * b


def _fc_relu_kernel(x_ref, w_ref, b_ref, out_ref, acc_ref):
    """Computes one (tm, tn) output tile; grid axis 2 (K) is the reduction."""
    k = pl.program_id(2)

    @pl.when(k == 0)
    def _():
        acc_ref[...] = jnp.zeros_like(acc_ref)

    # x_ref: (tm, tk); w_ref: (tn, tk) in torch layout.  Contract the K dims so
    # the transpose is handled by the MXU (trans_b) rather than an HBM copy.
    acc_ref[...] += lax.dot_general(
        x_ref[...],
        w_ref[...],
        dimension_numbers=(((1,), (1,)), ((), ())),
        preferred_element_type=jnp.float32,
    )

    @pl.when(k == pl.num_programs(2) - 1)
    def _():
        y = acc_ref[...] + b_ref[...].astype(jnp.float32)
        out_ref[...] = jnp.maximum(y, 0.0).astype(out_ref.dtype)


def after_attention_forward(x, weight, bias, *,
                            tm=256, tn=256, tk=512,
                            compute_dtype=jnp.bfloat16):
    """x: (B, ...) flattened to (B, K).  weight: (N, K) torch-style.  bias: (N,).

    Returns (feature, relu(fc(feature))) matching the PyTorch module.
    Default tile sizes (256, 256, 512) fit comfortably in v7x's 64 MiB VMEM with
    double buffering; they are clamped down automatically for small shapes.
    """
    B = x.shape[0]
    x_flat = x.reshape(B, -1)
    K = x_flat.shape[1]
    N, Kw = weight.shape
    assert Kw == K, "in_channels must equal flattened feature size"

    # Feature output is bit-identical to the flattened input: no kernel copy.
    feature = x_flat

    out_dtype = x_flat.dtype

    # Clamp tiles to (padded) problem dims; keep lane/sublane alignment
    # (second-minor multiple of 16 covers bf16 packing, minor multiple of 128).
    tm = max(16, min(tm, _round_up(B, 16)))
    tn = max(128, min(tn, _round_up(N, 128)))
    tk = max(128, min(tk, _round_up(K, 128)))

    Mp = _round_up(B, tm)
    Np = _round_up(N, tn)
    Kp = _round_up(K, tk)

    # Zero-pad to tile multiples (padded K columns contribute 0 to the dot;
    # padded M rows / N columns are sliced off afterwards).
    x_p = jnp.pad(x_flat, ((0, Mp - B), (0, Kp - K))).astype(compute_dtype)
    w_p = jnp.pad(weight, ((0, Np - N), (0, Kp - K))).astype(compute_dtype)
    b_p = jnp.pad(bias, (0, Np - N)).astype(jnp.float32).reshape(1, Np)

    grid = (Mp // tm, Np // tn, Kp // tk)

    out_padded = pl.pallas_call(
        _fc_relu_kernel,
        out_shape=jax.ShapeDtypeStruct((Mp, Np), out_dtype),
        grid_spec=pltpu.PrefetchScalarGridSpec(
            num_scalar_prefetch=0,
            grid=grid,
            in_specs=[
                pl.BlockSpec((tm, tk), lambda i, j, k: (i, k)),   # x tile
                pl.BlockSpec((tn, tk), lambda i, j, k: (j, k)),   # weight tile (N,K)
                pl.BlockSpec((1, tn), lambda i, j, k: (0, j)),    # bias tile
            ],
            out_specs=pl.BlockSpec((tm, tn), lambda i, j, k: (i, j)),
            scratch_shapes=[pltpu.VMEM((tm, tn), jnp.float32)],
        ),
        compiler_params=pltpu.CompilerParams(
            dimension_semantics=("parallel", "parallel", "arbitrary"),
        ),
    )(x_p, w_p, b_p)

    out = out_padded[:B, :N]
    return feature, out


if __name__ == "__main__":
    # Small shapes consistent with the forward: x (B, C, H, W) flattened to
    # (B, K); in_channels = K = C*H*W = 1024, out_channels = 128 (lane-dense).
    B, C, H, W = 2, 4, 16, 16
    in_channels = C * H * W          # 1024
    out_channels = 128

    key = jax.random.PRNGKey(0)
    kx, kw, kb = jax.random.split(key, 3)
    x = jax.random.normal(kx, (B, C, H, W), dtype=jnp.float32)
    # Deterministic synthetic parameters (shapes from nn.Linear(in, out)):
    weight = jax.random.normal(kw, (out_channels, in_channels), dtype=jnp.float32) * 0.1
    bias = jax.random.normal(kb, (out_channels,), dtype=jnp.float32) * 0.1

    feature, out = after_attention_forward(x, weight, bias)
    jax.block_until_ready((feature, out))

    # Reference in plain JAX, matching the kernel's bf16 compute / f32 accumulate.
    x_flat = x.reshape(B, -1)
    ref_feature = x_flat
    xb = x_flat.astype(jnp.bfloat16)
    wb = weight.astype(jnp.bfloat16)
    ref_out = jnp.maximum(
        jnp.dot(xb, wb.T, preferred_element_type=jnp.float32) + bias, 0.0
    ).astype(x.dtype)

    assert feature.shape == ref_feature.shape and out.shape == ref_out.shape
    assert jnp.allclose(feature, ref_feature)                      # bit-identical passthrough
    assert jnp.allclose(out, ref_out, atol=2e-2, rtol=2e-2)        # bf16 matmul tolerance

    print("KERNEL_OK")
</pallas_src>

<mosaic_0001>
module attributes {stable_mosaic.version = 11 : i64} {
  func.func @_fc_relu_kernel(%arg0: i32, %arg1: i32, %arg2: i32, %arg3: memref<16x512xbf16, #tpu.memory_space<vmem>>, %arg4: memref<128x512xbf16, #tpu.memory_space<vmem>>, %arg5: memref<1x128xf32, #tpu.memory_space<vmem>>, %arg6: memref<16x128xf32, #tpu.memory_space<vmem>>, %arg7: memref<16x128xf32, #tpu.memory_space<vmem>>) attributes {dimension_semantics = [#tpu.dimension_semantics<parallel>, #tpu.dimension_semantics<parallel>, #tpu.dimension_semantics<arbitrary>], iteration_bounds = array<i64: 1, 1, 2>, scalar_prefetch = 0 : i64, scratch_operands = 1 : i64, tpu.core_type = #tpu.core_type<tc>, window_params = [{transform_indices = @transform_0, window_bounds = array<i64: 16, 512>}, {transform_indices = @transform_1, window_bounds = array<i64: 128, 512>}, {transform_indices = @transform_2, window_bounds = array<i64: 1, 128>}, {transform_indices = @transform_3, window_bounds = array<i64: 16, 128>}]} {
    %c0_i32 = arith.constant 0 : i32
    %0 = arith.cmpi eq, %arg2, %c0_i32 : i32
    %1 = arith.extui %0 : i1 to i32
    %c0_i32_0 = arith.constant 0 : i32
    %2 = arith.cmpi ne, %1, %c0_i32_0 : i32
    scf.if %2 {
      %cst_9 = arith.constant 0.000000e+00 : f32
      %12 = vector.broadcast %cst_9 : f32 to vector<16x128xf32>
      %c0_10 = arith.constant 0 : index
      %c0_11 = arith.constant 0 : index
      %13 = vector.load %arg7[%c0_10, %c0_11] : memref<16x128xf32, #tpu.memory_space<vmem>>, vector<16x128xf32>
      tpu.vector_store %arg7[%c0_10, %c0_11], %12 {strides = array<i32>} : memref<16x128xf32, #tpu.memory_space<vmem>>, vector<16x128xf32>,
    } else {
    }
    %c0 = arith.constant 0 : index
    %c0_1 = arith.constant 0 : index
    %3 = vector.load %arg7[%c0, %c0_1] : memref<16x128xf32, #tpu.memory_space<vmem>>, vector<16x128xf32>
    %c0_2 = arith.constant 0 : index
    %c0_3 = arith.constant 0 : index
    %4 = vector.load %arg3[%c0_2, %c0_3] : memref<16x512xbf16, #tpu.memory_space<vmem>>, vector<16x512xbf16>
    %c0_4 = arith.constant 0 : index
    %c0_5 = arith.constant 0 : index
    %5 = vector.load %arg4[%c0_4, %c0_5] : memref<128x512xbf16, #tpu.memory_space<vmem>>, vector<128x512xbf16>
    %cst = arith.constant dense<0.000000e+00> : vector<16x128xf32>
    %6 = tpu.matmul %4, %5, %cst {dimension_numbers = #tpu.dot_dimension_numbers<[1], [1], [0], [0], [0, 0, 1, 0], [], []>} : vector<16x512xbf16>, vector<128x512xbf16>, vector<16x128xf32> -> vector<16x128xf32>
    %7 = arith.addf %3, %6 : vector<16x128xf32>
    %c0_6 = arith.constant 0 : index
    %c0_7 = arith.constant 0 : index
    %8 = vector.load %arg7[%c0_6, %c0_7] : memref<16x128xf32, #tpu.memory_space<vmem>>, vector<16x128xf32>
    tpu.vector_store %arg7[%c0_6, %c0_7], %7 {strides = array<i32>} : memref<16x128xf32, #tpu.memory_space<vmem>>, vector<16x128xf32>,
    %c1_i32 = arith.constant 1 : i32
    %9 = arith.cmpi eq, %arg2, %c1_i32 : i32
    %10 = arith.extui %9 : i1 to i32
    %c0_i32_8 = arith.constant 0 : i32
    %11 = arith.cmpi ne, %10, %c0_i32_8 : i32
    scf.if %11 {
      %c0_9 = arith.constant 0 : index
      %c0_10 = arith.constant 0 : index
      %12 = vector.load %arg7[%c0_9, %c0_10] : memref<16x128xf32, #tpu.memory_space<vmem>>, vector<16x128xf32>
      %c0_11 = arith.constant 0 : index
      %c0_12 = arith.constant 0 : index
      %13 = vector.load %arg5[%c0_11, %c0_12] : memref<1x128xf32, #tpu.memory_space<vmem>>, vector<1x128xf32>
      %14 = vector.broadcast %13 : vector<1x128xf32> to vector<16x128xf32>
      %15 = arith.addf %12, %14 : vector<16x128xf32>
      %cst_13 = arith.constant 0.000000e+00 : f32
      %16 = vector.broadcast %cst_13 : f32 to vector<16x128xf32>
      %17 = arith.maximumf %15, %16 : vector<16x128xf32>
      %c0_14 = arith.constant 0 : index
      %c0_15 = arith.constant 0 : index
      %18 = vector.load %arg6[%c0_14, %c0_15] : memref<16x128xf32, #tpu.memory_space<vmem>>, vector<16x128xf32>
      tpu.vector_store %arg6[%c0_14, %c0_15], %17 {strides = array<i32>} : memref<16x128xf32, #tpu.memory_space<vmem>>, vector<16x128xf32>,
    } else {
    }
    return
  }
  func.func @transform_0(%arg0: i32, %arg1: i32, %arg2: i32) -> (i32, i32) {
    %c0_i32 = arith.constant 0 : i32
    return %arg0, %arg2 : i32, i32
  }
  func.func @transform_1(%arg0: i32, %arg1: i32, %arg2: i32) -> (i32, i32) {
    %c0_i32 = arith.constant 0 : i32
    return %arg1, %arg2 : i32, i32
  }
  func.func @transform_2(%arg0: i32, %arg1: i32, %arg2: i32) -> (i32, i32) {
    %c0_i32 = arith.constant 0 : i32
    %c0_i32_0 = arith.constant 0 : i32
    return %c0_i32, %arg1 : i32, i32
  }
  func.func @transform_3(%arg0: i32, %arg1: i32, %arg2: i32) -> (i32, i32) {
    %c0_i32 = arith.constant 0 : i32
    return %arg0, %arg1 : i32, i32
  }
}

</mosaic_0001>

<bundles_post_ra>
// kernel: tpu_custom_call.1
= control target key start
LH: loop header
LB: loop body
LE: loop exit
PB: predicated region body
PF: predicated region fallthrough
CT: control target
= control target key end

     0   :  { %8 = vsyncpa [#allocation4], 0  ;;  %s1335_s0 = inlined_call_operand.hbm [shape: bf16[16,1024], index: 0, kind: input, shape index: {}]   ;;  %s1336_s1 = inlined_call_operand.hbm [shape: bf16[128,1024], index: 1, kind: input, shape index: {}]   ;;  %s1337_s2 = inlined_call_operand.vmem [shape: f32[1,128], index: 2, kind: input, shape index: {}]   ;;  %s1338_s3 = inlined_call_operand.hbm [shape: f32[16,128], index: 3, kind: output, shape index: {}]  }
   0x1   :  { %10 = vsyncpa [#allocation4 + $0x1], 0 }
   0x2   :  { %11 = vsyncpa [#allocation7], 0 }
   0x3   :  { %13 = vsyncpa [#allocation7 + $0x1], 0 }
   0x4   :  { %14 = vsyncpa [#allocation5], 0  ;;  %s1082_s12 = smov 0   ;;  %s1084_s13 = smov 0  }
   0x5   :  { %s1086_s14 = smov 0   ;;  %s1088_s15 = smov 0  }
   0x6   :  { %s1090_s16 = smov 0   ;;  %s1092_s17 = smov 0  }
   0x7 LB: > { %s722_s18 = sadd.s32 4294967295, %s1051_s17   ;;  %s32_s19 = sadd.s32 1, %s1047_s16  ;;  %s1051_s17 = sphi %s1092_s17, %s20_s17   ;;  %s1047_s16 = sphi %s1090_s16, %s1351_s16   ;;  %s1043_s15 = sphi %s1088_s15, %s1350_s15   ;;  %s1039_s14 = sphi %s1086_s14, %s1349_s14   ;;  %s1035_s13 = sphi %s1084_s13, %s1348_s13   ;;  %s1031_s12 = sphi %s1082_s12, %s1347_s12  }
   0x8   : > { %p33_p0 = scmp.ge.s32.totalorder %s32_s19, 2  ;;  %s48_s20 = sadd.s32 1, %s1039_s14 }
   0x9   : > { %p55_p1 = scmp.ne.s32.totalorder %s1039_s14, %s1035_s13  ;;  %p56_p2 = scmp.eq.s32.totalorder %s1051_s17, 0 }
   0xa   : > { %s1353_s19 = smov (%p33_p0, %s32_s19), 0  ;;  %p61_p4 = scmp.ne.s32.totalorder %s1035_s13, %s1031_s12 }
   0xb   : > { %p1118_p3 = por %p56_p2, %p55_p1  ;;  %s44_s22 = ssub.s32 %s1047_s16, %s1353_s19 }
   0xc   : > { %p62_p5 = scmp.eq.s32.totalorder %s722_s18, 0  ;;  %p46_p6 = scmp.eq.s32.totalorder %s44_s22, 0 }
   0xd   : > { %p795_p8 = scmp.lt.s32.totalorder %s1051_s17, 2  ;;  %s1136_s25 = sand.u32 1, %s1039_s14  }
   0xe   : > { %p1127_p7 = por %p62_p5, %p61_p4  ;;  %s778_s26 = sshll.u32 %s1047_s16, 8 }
   0xf   : > { %s1133_s24 = scalar_select %p46_p6, %s1039_s14, %s48_s20  }
  0x10   : > { %s1341_s23 = scalar_select %p1127_p7, 1, 0 }
  0x11   : > { %s726_s27 = sshll.u32 %s1136_s25, 5  ;;  %s1145_s30 = scalar_lea.hbm %s1335_s0, %s778_s26 }
  0x12   : > { %s177_s4 = scalar_lea.vmem [#allocation3], %s726_s27  ;;  %p1149_p9 = pnand %p795_p8, %p1118_p3 }
  0x13   : > { %s187_s5 = sshll.u32 %s177_s4, 4  ;;  %s174_s7 = scalar_lea.sflag [#allocation4], %s1136_s25  ;;  %s1153_s5 = int_to_ptr.vmem [resolvable:$true] %s187_s5 }
  0x14   : > { %s907_s8 = scalar_lea.hbm %s1145_s30, 512  ;;  %p909_p12 = pneg %p1149_p9 }
  0x15   : > { %p908_p11 = scmp.ne.s32.totalorder %s1145_s30, %s907_s8  ;;  %s912_s11 = scalar_lea.hbm %s1335_s0, 1024 }
  0x16   : > { %p913_p1 = scmp.lt.u32.totalorder %s1145_s30, %s1335_s0  ;;  %p914_p2 = scmp.lt.u32.totalorder %s912_s11, %s907_s8 }
  0x17   : > { %p910_p13 = pnand %p909_p12, %p908_p11  ;;  %p916_p4 = scmp.lt.u32.totalorder %s907_s8, %s1145_s30 }
  0x18   : > { %p915_p3 = por %p914_p2, %p913_p1 }
  0x19   : > { %p911_p0 = pneg %p910_p13 }
  0x1a   : > { %p917_p5 = por %p916_p4, %p915_p3 }
  0x1c   : > { %p918_p6 = pnand %p917_p5, %p911_p0 }
  0x1e   : > { %921 = shalt.err (!%p918_p6)
}
  0x1f   : > { %s922_s21 = scalar_lea.vmem %s1153_s5, 512  ;;  %s1053_s22 = smov [#allocation3]  }
  0x20   : > { %p923_p8 = scmp.ne.s32.totalorder %s1153_s5, %s922_s21  ;;  %s927_s27 = sshll.u32 %s1053_s22, 4  ;;  %s928_s27 = int_to_ptr.vmem [resolvable:$false] %s927_s27 }
  0x21   : > { %s929_s28 = scalar_lea.vmem %s928_s27, 1024  ;;  %p930_p10 = scmp.lt.s32.totalorder %s1153_s5, %s928_s27 }
  0x22   : > { %p925_p11 = pnand %p923_p8, %p909_p12  ;;  %p931_p1 = scmp.lt.s32.totalorder %s929_s28, %s922_s21 }
  0x24   : > { %p926_p13 = pneg %p925_p11  ;;  %p932_p2 = por %p931_p1, %p930_p10 }
  0x26   : > { %p933_p3 = pnand %p932_p2, %p926_p13 }
  0x28   : > { %936 = shalt.err (!%p933_p3)
}
  0x29   : > { %s1054_s29 = smov 512   ;;  %s1055_s4 = smov 256  }
  0x2a   : > { %s1056_s8 = smov 16   ;;  %p219_p10 = scmp.lt.s32.totalorder %s1051_s17, 3 }
  0x2b   : > { %791 = dma.hbm_to_vmem [thread:$0]  (!%p1149_p9), %s1145_s30, 512, %s1153_s5, %s174_s7, %s1054_s29, %s1055_s4, %s1056_s8  }
  0x2c   : > { %s729_s9 = sshll.u32 %s1136_s25, 8  ;;  %s1194_s12 = scalar_lea.hbm %s1336_s1, %s778_s26 }
  0x2d   : > { %p1343_p0 = scmp.ge.s32.totalorder %s1051_s17, 1  ;;  %s201_s21 = scalar_lea.vmem [#allocation6], %s729_s9 }
  0x2e   : > { %s211_s22 = sshll.u32 %s201_s21, 4  ;;  %s198_s30 = scalar_lea.sflag [#allocation7], %s1136_s25  ;;  %s1202_s22 = int_to_ptr.vmem [resolvable:$true] %s211_s22 }
  0x2f   : > { %p1198_p4 = pnand %p1343_p0, %p219_p10  ;;  %s937_s5 = scalar_lea.hbm %s1194_s12, 4096 }
  0x30   : > { %p938_p5 = scmp.ne.s32.totalorder %s1194_s12, %s937_s5  ;;  %s942_s27 = scalar_lea.hbm %s1336_s1, 8192 }
  0x31   : > { %p943_p11 = scmp.lt.u32.totalorder %s1194_s12, %s1336_s1  ;;  %p944_p13 = scmp.lt.u32.totalorder %s942_s27, %s937_s5 }
  0x32   : > { %p940_p6 = pnand %p938_p5, %p909_p12  ;;  %p946_p2 = scmp.lt.u32.totalorder %s937_s5, %s1194_s12 }
  0x33   : > { %p945_p1 = por %p944_p13, %p943_p11 }
  0x34   : > { %p941_p8 = pneg %p940_p6 }
  0x35   : > { %p947_p3 = por %p946_p2, %p945_p1 }
  0x37   : > { %p948_p10 = pnand %p947_p3, %p941_p8 }
  0x39   : > { %951 = shalt.err (!%p948_p10)
}
  0x3a   : > { %s952_s9 = scalar_lea.vmem %s1202_s22, 4096  ;;  %s1057_s11 = smov [#allocation6]  }
  0x3b   : > { %p953_p0 = scmp.ne.s32.totalorder %s1202_s22, %s952_s9  ;;  %s957_s21 = sshll.u32 %s1057_s11, 4  ;;  %s958_s21 = int_to_ptr.vmem [resolvable:$false] %s957_s21 }
  0x3c   : > { %s959_s26 = scalar_lea.vmem %s958_s21, 8192  ;;  %p960_p7 = scmp.lt.s32.totalorder %s1202_s22, %s958_s21 }
  0x3d   : > { %p955_p5 = pnand %p953_p0, %p909_p12  ;;  %p961_p11 = scmp.lt.s32.totalorder %s959_s26, %s952_s9 }
  0x3f   : > { %p956_p6 = pneg %p955_p5  ;;  %p962_p13 = por %p961_p11, %p960_p7 }
  0x41   : > { %p963_p1 = pnand %p962_p13, %p956_p6 }
  0x43   : > { %966 = shalt.err (!%p963_p1)
}
  0x44   : > { %794 = dma.hbm_to_vmem [thread:$0]  (!%p1149_p9), %s1194_s12, 4096, %s1202_s22, %s198_s30, %s1054_s29, %s1055_s4, %s1056_s8  }
  0x45   : > { %223 = sbr.rel (%p1198_p4) target bundleno = 411 (0x19b), region = 32  ;;  %s225_s5 = sand.u32 (!%p1198_p4), 1, %s1035_s13  }
  0x46   : > { %s733_s7 = sshll.u32 (!%p1198_p4), %s225_s5, 5  ;;  %s226_s27 = scalar_lea.sflag (!%p1198_p4), [#allocation4], %s225_s5 }
  0x47   : > { %s1236_s28 = scalar_lea.vmem (!%p1198_p4), [#allocation3], %s733_s7  ;;  %p1345_p7 = scmp.ne.s32.totalorder (!%p1198_p4), %s1341_s23, 0 }
  0x4c   : > { %1018 = dma.done.wait (%p1345_p7), %s226_s27, 512  }
  0x4d   : > { %1020 = vsyncadd (%p1345_p7), %s226_s27, 4294966784  ;;  %s734_s25 = sshll.u32 %s225_s5, 8  ;;  %s235_s6 = scalar_lea.sflag [#allocation7], %s225_s5 }
  0x4e   : > { %s1242_s10 = scalar_lea.vmem [#allocation6], %s734_s25 }
  0x4f   : > { %1022 = dma.done.wait (%p1345_p7), %s235_s6, 4096  }
  0x50   : > { %1024 = vsyncadd (%p1345_p7), %s235_s6, 4294963200  ;;  %p735_p9 = scmp.ne.s32.totalorder %s1043_s15, 0 }
  0x51   : > { %v1058_v0 = vmov (!%p735_p9), 0.0  }
  0x52   : > { %276 = sbr.rel (%p735_p9) target bundleno = 89 (0x59), region = 44  ;;  %277 = vst [vmem:[#allocation2] sm:$0xff] (!%p735_p9), %v1058_v0  ;;  %278 = vst [vmem:[#allocation2 + $0x8] sm:$0xff] (!%p735_p9), %v1058_v0 }
  0x59 PF: > { %v853_v1 = vld [vmem:[%s1242_s10 + $0x4] ss:$16 sps:$4 sm:$0xff]   ;;  %v855_v2 = vld [vmem:[%s1242_s10 + $0xc] ss:$16 sps:$4 sm:$0xff]   ;;  %v857_v3 = vld [vmem:[%s1242_s10] ss:$16 sps:$4 sm:$0xff]  }
  0x5a   : > { %497 = vmatprep.subr.bf16.mxu0 %v853_v1  ;;  %v858_v4 = vld [vmem:[%s1242_s10 + $0x8] ss:$16 sps:$4 sm:$0xff]   ;;  %538 = vmatprep.subr.bf16.mxu1 %v855_v2  ;;  %v859_v5 = vld [vmem:[%s1242_s10 + $0x24] ss:$16 sps:$4 sm:$0xff]   ;;  %v861_v6 = vld [vmem:[%s1242_s10 + $0x2c] ss:$16 sps:$4 sm:$0xff]  }
  0x5b   : > { %498 = vmatpush1.bf16.xpose.msra.mxu0 %v857_v3  ;;  %539 = vmatpush1.bf16.xpose.msra.mxu1 %v858_v4  ;;  %v863_v7 = vld [vmem:[%s1242_s10 + $0x20] ss:$16 sps:$4 sm:$0xff]   ;;  %v864_v8 = vld [vmem:[%s1242_s10 + $0x28] ss:$16 sps:$4 sm:$0xff]   ;;  %v865_v9 = vld [vmem:[%s1242_s10 + $0x44] ss:$16 sps:$4 sm:$0xff]  }
  0x5c   : > { %499 = vmatprep.subr.bf16.mxu0 %v859_v5  ;;  %540 = vmatprep.subr.bf16.mxu1 %v861_v6  ;;  %v867_v10 = vld [vmem:[%s1242_s10 + $0x4c] ss:$16 sps:$4 sm:$0xff]   ;;  %v869_v11 = vld [vmem:[%s1242_s10 + $0x40] ss:$16 sps:$4 sm:$0xff]   ;;  %v870_v12 = vld [vmem:[%s1242_s10 + $0x48] ss:$16 sps:$4 sm:$0xff]  }
  0x5d   : > { %v871_v13 = vld [vmem:[%s1242_s10 + $0x64] ss:$16 sps:$4 sm:$0xff]   ;;  %v873_v14 = vld [vmem:[%s1242_s10 + $0x6c] ss:$16 sps:$4 sm:$0xff]   ;;  %v875_v17 = vld [vmem:[%s1242_s10 + $0x60] ss:$16 sps:$4 sm:$0xff]  }
  0x5e   : > { %v903_v15 = vld [vmem:[%s1236_s28 + $0x4] ss:$16 sps:$4 sm:$0xff]   ;;  %v906_v16 = vld [vmem:[%s1236_s28 + $0xc] ss:$16 sps:$4 sm:$0xff]   ;;  %v876_v18 = vld [vmem:[%s1242_s10 + $0x68] ss:$16 sps:$4 sm:$0xff]  }
  0x5f   : > { %529 = vmatprep.mubr.bf16.mxu0 %v903_v15  ;;  %v877_v19 = vld [vmem:[%s1242_s10 + $0x84] ss:$16 sps:$4 sm:$0xff]   ;;  %v879_v20 = vld [vmem:[%s1242_s10 + $0x8c] ss:$16 sps:$4 sm:$0xff]   ;;  %570 = vmatprep.mubr.bf16.mxu1 %v906_v16  ;;  %v881_v21 = vld [vmem:[%s1242_s10 + $0x80] ss:$16 sps:$4 sm:$0xff]  }
  0x60   : > { %v882_v22 = vld [vmem:[%s1242_s10 + $0x88] ss:$16 sps:$4 sm:$0xff]   ;;  %v883_v23 = vld [vmem:[%s1242_s10 + $0xa4] ss:$16 sps:$4 sm:$0xff]   ;;  %v885_v24 = vld [vmem:[%s1242_s10 + $0xac] ss:$16 sps:$4 sm:$0xff]  }
  0x61   : > { %v887_v25 = vld [vmem:[%s1242_s10 + $0xa0] ss:$16 sps:$4 sm:$0xff]   ;;  %v888_v26 = vld [vmem:[%s1242_s10 + $0xa8] ss:$16 sps:$4 sm:$0xff]   ;;  %v889_v27 = vld [vmem:[%s1242_s10 + $0xc4] ss:$16 sps:$4 sm:$0xff]  }
  0x62   : > { %v891_v28 = vld [vmem:[%s1242_s10 + $0xcc] ss:$16 sps:$4 sm:$0xff]   ;;  %v893_v29 = vld [vmem:[%s1242_s10 + $0xc0] ss:$16 sps:$4 sm:$0xff]   ;;  %v894_v30 = vld [vmem:[%s1242_s10 + $0xc8] ss:$16 sps:$4 sm:$0xff]  }
  0x63   : > { %500 = vmatpush1.bf16.xpose.msra.mxu0 %v863_v7  ;;  %541 = vmatpush1.bf16.xpose.msra.mxu1 %v864_v8  ;;  %v895_v31 = vld [vmem:[%s1242_s10 + $0xe4] ss:$16 sps:$4 sm:$0xff]   ;;  %v897_v32 = vld [vmem:[%s1242_s10 + $0xec] ss:$16 sps:$4 sm:$0xff]   ;;  %v899_v33 = vld [vmem:[%s1242_s10 + $0xe0] ss:$16 sps:$4 sm:$0xff]  }
  0x64   : > { %501 = vmatprep.subr.bf16.mxu0 %v865_v9  ;;  %542 = vmatprep.subr.bf16.mxu1 %v867_v10  ;;  %v900_v34 = vld [vmem:[%s1242_s10 + $0xe8] ss:$16 sps:$4 sm:$0xff]   ;;  %v901_v35 = vld [vmem:[%s1236_s28] ss:$16 sps:$4 sm:$0xff]   ;;  %p772_p12 = scmp.ne.s32.totalorder %s1043_s15, 1 }
  0x65   : > { %v904_v36 = vld [vmem:[%s1236_s28 + $0x8] ss:$16 sps:$4 sm:$0xff]   ;;  %v279_v38 = vld [vmem:[#allocation2] sm:$0xff] }
  0x66   : > { %v280_v44 = vld [vmem:[#allocation2 + $0x8] sm:$0xff]  ;;  %v773_v52 = vld [vmem:[%s1337_s2] ss:$0 sm:$0xff] (!%p772_p12) }
  0x6b   : > { %502 = vmatpush1.bf16.xpose.msra.mxu0 %v869_v11  ;;  %543 = vmatpush1.bf16.xpose.msra.mxu1 %v870_v12 }
  0x6c   : > { %503 = vmatprep.subr.bf16.mxu0 %v871_v13  ;;  %544 = vmatprep.subr.bf16.mxu1 %v873_v14 }
  0x73   : > { %504 = vmatpush1.bf16.xpose.msra.mxu0 %v875_v17  ;;  %545 = vmatpush1.bf16.xpose.msra.mxu1 %v876_v18 }
  0x74   : > { %505 = vmatprep.subr.bf16.mxu0 %v877_v19  ;;  %546 = vmatprep.subr.bf16.mxu1 %v879_v20 }
  0x7b   : > { %506 = vmatpush1.bf16.xpose.msra.mxu0 %v881_v21  ;;  %547 = vmatpush1.bf16.xpose.msra.mxu1 %v882_v22 }
  0x7c   : > { %507 = vmatprep.subr.bf16.mxu0 %v883_v23  ;;  %548 = vmatprep.subr.bf16.mxu1 %v885_v24 }
  0x83   : > { %508 = vmatpush1.bf16.xpose.msra.mxu0 %v887_v25  ;;  %549 = vmatpush1.bf16.xpose.msra.mxu1 %v888_v26 }
  0x84   : > { %509 = vmatprep.subr.bf16.mxu0 %v889_v27  ;;  %550 = vmatprep.subr.bf16.mxu1 %v891_v28 }
  0x8b   : > { %510 = vmatpush1.bf16.xpose.msra.mxu0 %v893_v29  ;;  %551 = vmatpush1.bf16.xpose.msra.mxu1 %v894_v30 }
  0x8c   : > { %511 = vmatprep.subr.bf16.mxu0 %v895_v31  ;;  %552 = vmatprep.subr.bf16.mxu1 %v897_v32 }
  0x93   : > { %512 = vmatpush1.bf16.xpose.msra.mxu0 %v899_v33  ;;  %553 = vmatpush1.bf16.xpose.msra.mxu1 %v900_v34 }
  0x9a   : > { %530 = vmatmul.mubr.bf16.vlgmr.msra.gmra.mrb[0].mxu0 %v901_v35  ;;  %571 = vmatmul.mubr.bf16.vlgmr.msra.gmra.mrb[0].mxu1 %v904_v36 }
 0x16d   : > { %v531_v37 = vpop.f32.mrb[0].mxu0  ;;  %v572_v39 = vpop.f32.mrb[0].mxu1 }
 0x16e   : > { %v573_v40 = vadd.f32 %v572_v39, %v531_v37  ;;  %v533_v41 = vpop.f32.mrb[1].mxu0  ;;  %v574_v42 = vpop.f32.mrb[1].mxu1  ;;  %586 = sbr.rel (%p772_p12) target bundleno = 385 (0x181), region = 48 }
 0x16f   : > { %v534_v43 = vpop.f32.mrb[2].mxu0  ;;  %v575_v45 = vpop.f32.mrb[2].mxu1 }
 0x170   : > { %v579_v46 = vadd.f32 %v573_v40, %v279_v38  ;;  %v576_v47 = vadd.f32 %v575_v45, %v534_v43  ;;  %v536_v48 = vpop.f32.mrb[3].mxu0  ;;  %v577_v49 = vpop.f32.mrb[3].mxu1 }
 0x172   : > { %581 = vst [vmem:[#allocation2] sm:$0xff] %v579_v46  ;;  %v580_v50 = vadd.f32 %v576_v47, %v280_v44 }
 0x174   : > { %582 = vst [vmem:[#allocation2 + $0x8] sm:$0xff] %v580_v50 }
 0x179   : > { %v587_v51 = vld [vmem:[#allocation2] sm:$0xff] }
 0x17a   : > { %v596_v54 = vadd.f32 %v773_v52, %v587_v51 }
 0x17b   : > { %v588_v53 = vld [vmem:[#allocation2 + $0x8] sm:$0xff] }
 0x17c   : > { %v597_v55 = vadd.f32 %v773_v52, %v588_v53  ;;  %v598_v56 = vmax.f32 %v596_v54, 0.0 }
 0x17e   : > { %v599_v57 = vmax.f32 %v597_v55, 0.0  ;;  %600 = vst [vmem:[#allocation8] sm:$0xff] %v598_v56 }
 0x180   : > { %601 = vst [vmem:[#allocation8 + $0x8] sm:$0xff] %v599_v57 }
 0x181 PF: > { %p1291_p4 = scmp.eq.s32.totalorder %s722_s18, 1  ;;  %s1059_s15 = smov [#allocation8]  }
 0x182   : > { %s612_s8 = sshll.u32 %s1059_s15, 4  ;;  %s613_s8 = int_to_ptr.vmem [resolvable:$true] %s612_s8 }
 0x183   : > { %s967_s12 = scalar_lea.vmem %s613_s8, 256  ;;  %p974_p10 = scmp.lt.s32.totalorder %s613_s8, %s613_s8 }
 0x184   : > { %p968_p8 = scmp.ne.s32.totalorder %s613_s8, %s967_s12  ;;  %p975_p0 = scmp.lt.s32.totalorder %s967_s12, %s967_s12 }
 0x186   : > { %p969_p2 = pnand %p968_p8, %p1291_p4  ;;  %p976_p5 = por %p975_p0, %p974_p10 }
 0x188   : > { %p970_p3 = pneg %p969_p2 }
 0x18a   : > { %p977_p6 = pnand %p976_p5, %p970_p3 }
 0x18c   : > { %980 = shalt.err (!%p977_p6)
}
 0x18d   : > { %s981_s18 = scalar_lea.hbm %s1338_s3, 256 }
 0x18e   : > { %p982_p11 = scmp.ne.s32.totalorder %s1338_s3, %s981_s18  ;;  %p987_p7 = scmp.lt.u32.totalorder %s981_s18, %s1338_s3 }
 0x190   : > { %p983_p13 = pnand %p982_p11, %p1291_p4 }
 0x192   : > { %p984_p1 = pneg %p983_p13 }
 0x194   : > { %p989_p9 = pnand %p987_p7, %p984_p1 }
 0x196   : > { %992 = shalt.err (!%p989_p9)
}
 0x197   : > { %s1060_s26 = smov 128   ;;  %s1061_s5 = smov 8  }
 0x198   : > { %785 = dma.vmem_to_hbm [thread:$0]  (%p1291_p4), %s613_s8, 256, %s1338_s3, [#allocation5], %s1060_s26, %s1060_s26, %s1061_s5  }
 0x199   : > { %1026 = dma.done.wait (%p1291_p4), [#allocation5], 256  }
 0x19a   : > { %1028 = vsyncadd (%p1291_p4), [#allocation5], 4294967040 }
 0x19b PF: > { %s20_s17 = sadd.s32 1, %s1051_s17   ;;  %s1347_s12 = smov %s1035_s13 }
 0x19c   : > { %p17_p12 = scmp.ge.s32.totalorder %s20_s17, 4   ;;  %s1348_s13 = smov %s1039_s14 }
 0x19d   : > { %s1349_s14 = smov %s1133_s24  ;;  %s1350_s15 = smov %s1047_s16 }
 0x19e   : > { %s1351_s16 = smov %s1353_s19  ;;  %19 = sbr.rel (!%p17_p12) target bundleno = 7 (0x7), region = 94 }
 0x1a5   :  { %628 = vsyncpa [#allocation4], 1 }
 0x1a6   :  { %630 = vsyncpa [#allocation4 + $0x1], 1 }
 0x1a7   :  { %631 = vsyncpa [#allocation7], 1 }
 0x1a8   :  { %633 = vsyncpa [#allocation7 + $0x1], 1 }
 0x1a9   :  { %634 = vsyncpa [#allocation5], 1 }
 0x1aa   :  { %636 = vsyncpa [#allocation5 + $0x1], 1 }

</bundles_post_ra>
